<compile_context>
chip_gen: v7x
topology: tpu7x:2x2x1
jax: 0.10.0
libtpu: 0.0.40
codegen_flags: <defaults>
</compile_context>

<pallas_src>
import functools

import jax
import jax.numpy as jnp
from jax.experimental import pallas as pl
from jax.experimental.pallas import tpu as pltpu


def _swiglu_kernel(x_ref, w1_ref, w3_ref, w2_ref, o_ref, acc_ref):
    # x_ref:   (tm, dim)      token tile (resident across j)
    # w1_ref:  (dim, tn)      gate-projection tile for hidden-tile j
    # w3_ref:  (dim, tn)      up-projection tile for hidden-tile j
    # w2_ref:  (tn, dim)      down-projection tile for hidden-tile j
    # o_ref:   (tm, dim)      output tile (written once, at j == last)
    # acc_ref: (tm, dim) f32  accumulator scratch (resident across j)
    j = pl.program_id(1)

    @pl.when(j == 0)
    def _():
        acc_ref[...] = jnp.zeros_like(acc_ref)

    x = x_ref[...]
    # Gate / up projections on the MXU, f32 accumulation.
    h1 = jnp.dot(x, w1_ref[...], preferred_element_type=jnp.float32)
    h3 = jnp.dot(x, w3_ref[...], preferred_element_type=jnp.float32)
    # SiLU(h1) * h3 in f32 (VPU + EUP).
    gated = (h1 * jax.nn.sigmoid(h1)) * h3
    # Partial down-projection; cast back to the (possibly bf16) operand dtype
    # so this matmul also runs at the fast MXU rate, accumulate in f32.
    acc_ref[...] += jnp.dot(gated.astype(x_ref.dtype), w2_ref[...],
                            preferred_element_type=jnp.float32)

    @pl.when(j == pl.num_programs(1) - 1)
    def _():
        o_ref[...] = acc_ref[...].astype(o_ref.dtype)


def _round_up(a, b):
    return ((a + b - 1) // b) * b


def _vmem_budget_bytes():
    """~85% of physical per-core VMEM (trace-time query, with safe fallback)."""
    try:
        cap = int(pltpu.get_tpu_info().vmem_capacity_bytes)
        if cap > 0:
            return int(cap * 0.85)
    except Exception:
        pass
    return 48 * 1024 * 1024  # conservative: fits v7x's 64 MiB physical VMEM


def _footprint_bytes(tm, tn, dim, itemsize):
    # Double-buffered pipelined I/O tiles + resident f32 accumulator + temps.
    io = 2 * (tm * dim + 2 * dim * tn + tn * dim + tm * dim) * itemsize
    acc = tm * dim * 4
    tmp = 3 * tm * tn * 4  # h1 / h3 / gated f32 intermediates
    return io + acc + tmp


@functools.partial(jax.jit, static_argnames=("tm", "tn", "compute_dtype"))
def swiglu_pallas(x, w1_t, w3_t, w2_t, *, tm=512, tn=512, compute_dtype=None):
    """x: (..., dim); w1_t/w3_t: (dim, hidden); w2_t: (hidden, dim)."""
    orig_shape = x.shape
    out_dtype = x.dtype
    dim = orig_shape[-1]
    hidden = w1_t.shape[1]

    # Optional operand cast (e.g. bf16 on v6e/v7x); accumulation stays f32.
    if compute_dtype is not None:
        cdt = jnp.dtype(compute_dtype)
        x = x.astype(cdt)
        w1_t = w1_t.astype(cdt)
        w3_t = w3_t.astype(cdt)
        w2_t = w2_t.astype(cdt)
    itemsize = jnp.dtype(x.dtype).itemsize

    # --- hidden (reduction) tile -------------------------------------------
    tn_eff = min(tn, hidden)
    assert hidden % tn_eff == 0, "hidden must be divisible by the hidden tile tn"
    assert tn_eff == hidden or tn_eff % 128 == 0, "tn must be 128-aligned (or == hidden)"

    # --- token tile: big for prefill, minimal padding for decode ------------
    x2d = x.reshape(-1, dim)
    m = x2d.shape[0]
    if m < tm:
        tm_eff = max(8, _round_up(m, 8))  # decode / small-M path
    else:
        tm_eff = _round_up(tm, 8)

    # Shrink tiles until the pipelined working set fits the VMEM budget.
    vmem_budget = _vmem_budget_bytes()
    while (_footprint_bytes(tm_eff, tn_eff, dim, itemsize) > vmem_budget
           and tm_eff > 128):
        tm_eff = max(128, (tm_eff // 2 // 8) * 8)
    while (_footprint_bytes(tm_eff, tn_eff, dim, itemsize) > vmem_budget
           and tn_eff > 128 and (tn_eff // 2) % 128 == 0
           and hidden % (tn_eff // 2) == 0):
        tn_eff //= 2
    nh = hidden // tn_eff

    m_pad = _round_up(m, tm_eff)
    if m_pad != m:
        # Zero padding is safe: silu(0) * 0 = 0 flows through the down-proj.
        x2d = jnp.pad(x2d, ((0, m_pad - m), (0, 0)))
    n_token_tiles = m_pad // tm_eff

    # --- VMEM limit: actual footprint + headroom, capped below physical -----
    footprint = _footprint_bytes(tm_eff, tn_eff, dim, itemsize)
    vmem_limit = int(min(max(int(footprint * 1.3), 32 * 1024 * 1024), vmem_budget))

    # Weights are re-streamed once per token tile.
    weight_bytes = (w1_t.size + w3_t.size + w2_t.size) * itemsize
    cost = pl.CostEstimate(
        flops=2 * m_pad * dim * hidden * 3,
        transcendentals=m_pad * hidden,
        bytes_accessed=(x2d.size + m_pad * dim) * itemsize
        + n_token_tiles * weight_bytes,
    )

    # TODO(synk): on v7x (2 TCs/chip) a single-token-tile decode grid leaves
    # one core idle; a decode-specific variant could split the hidden axis
    # across cores with per-core partial down-projections summed at the end.
    grid = (n_token_tiles, nh)
    out = pl.pallas_call(
        _swiglu_kernel,
        out_shape=jax.ShapeDtypeStruct((m_pad, dim), out_dtype),
        grid_spec=pltpu.PrefetchScalarGridSpec(
            num_scalar_prefetch=0,
            grid=grid,
            in_specs=[
                pl.BlockSpec((tm_eff, dim), lambda i, j: (i, 0)),   # x tile
                pl.BlockSpec((dim, tn_eff), lambda i, j: (0, j)),   # W1 tile
                pl.BlockSpec((dim, tn_eff), lambda i, j: (0, j)),   # W3 tile
                pl.BlockSpec((tn_eff, dim), lambda i, j: (j, 0)),   # W2 tile
            ],
            out_specs=pl.BlockSpec((tm_eff, dim), lambda i, j: (i, 0)),
            scratch_shapes=[pltpu.VMEM((tm_eff, dim), jnp.float32)],
        ),
        compiler_params=pltpu.CompilerParams(
            dimension_semantics=("parallel", "arbitrary"),
            vmem_limit_bytes=vmem_limit,
        ),
        cost_estimate=cost,
    )(x2d, w1_t, w3_t, w2_t)

    if m_pad != m:
        out = out[:m]
    return out.reshape(orig_shape)


def swiglu_ref(x, w1_t, w3_t, w2_t):
    h1 = x @ w1_t
    h3 = x @ w3_t
    return (jax.nn.silu(h1) * h3) @ w2_t


if __name__ == "__main__":
    # Small but lane-friendly shapes (dim / hidden multiples of 128 so the
    # output stores are lane-dense).
    batch, seq, dim, hidden_dim = 2, 8, 256, 512
    key = jax.random.PRNGKey(0)
    kx, k1, k2, k3 = jax.random.split(key, 4)

    x = jax.random.normal(kx, (batch, seq, dim), dtype=jnp.float32)

    # nn.Linear weight shape is (out, in); the kernel takes the transposed
    # (in, out) form so that  y = x @ w_t  matches PyTorch's  x @ weight.T.
    w1 = jax.random.normal(k1, (hidden_dim, dim), dtype=jnp.float32) * 0.05
    w3 = jax.random.normal(k3, (hidden_dim, dim), dtype=jnp.float32) * 0.05
    w2 = jax.random.normal(k2, (dim, hidden_dim), dtype=jnp.float32) * 0.05
    w1_t, w3_t, w2_t = w1.T, w3.T, w2.T

    ref = swiglu_ref(x, w1_t, w3_t, w2_t)

    # f32 path with the hidden axis tiled (tn=256 -> 2 accumulation steps).
    out = jax.block_until_ready(swiglu_pallas(x, w1_t, w3_t, w2_t, tn=256))
    assert out.shape == x.shape
    assert jnp.allclose(out, ref, atol=2e-4, rtol=2e-4), "f32 mismatch vs reference"

    # bf16 operand path (f32 accumulation inside) -- the v6e/v7x MXU-rate
    # config; expected slightly wider error than the f32 reference.
    out_bf16 = jax.block_until_ready(
        swiglu_pallas(x, w1_t, w3_t, w2_t, tn=256, compute_dtype=jnp.bfloat16))
    assert jnp.allclose(out_bf16, ref, atol=5e-2, rtol=5e-2), "bf16 mismatch"

    # Decode-style small-M path: one token, minimal (multiple-of-8) padding.
    xd = x[:1, :1]
    outd = jax.block_until_ready(swiglu_pallas(xd, w1_t, w3_t, w2_t))
    refd = swiglu_ref(xd, w1_t, w3_t, w2_t)
    assert jnp.allclose(outd, refd, atol=2e-4, rtol=2e-4), "decode mismatch"

    print("KERNEL_OK")
</pallas_src>

<mosaic_0001>
module attributes {stable_mosaic.version = 11 : i64} {
  func.func @_swiglu_kernel(%arg0: i32, %arg1: i32, %arg2: memref<16x256xf32, #tpu.memory_space<vmem>>, %arg3: memref<256x256xf32, #tpu.memory_space<vmem>>, %arg4: memref<256x256xf32, #tpu.memory_space<vmem>>, %arg5: memref<256x256xf32, #tpu.memory_space<vmem>>, %arg6: memref<16x256xf32, #tpu.memory_space<vmem>>, %arg7: memref<16x256xf32, #tpu.memory_space<vmem>>) attributes {dimension_semantics = [#tpu.dimension_semantics<parallel>, #tpu.dimension_semantics<arbitrary>], iteration_bounds = array<i64: 1, 2>, scalar_prefetch = 0 : i64, scratch_operands = 1 : i64, tpu.core_type = #tpu.core_type<tc>, window_params = [{transform_indices = @transform_0, window_bounds = array<i64: 16, 256>}, {transform_indices = @transform_1, window_bounds = array<i64: 256, 256>}, {transform_indices = @transform_2, window_bounds = array<i64: 256, 256>}, {transform_indices = @transform_3, window_bounds = array<i64: 256, 256>}, {transform_indices = @transform_4, window_bounds = array<i64: 16, 256>}]} {
    %c0_i32 = arith.constant 0 : i32
    %0 = arith.cmpi eq, %arg1, %c0_i32 : i32
    %1 = arith.extui %0 : i1 to i32
    %c0_i32_0 = arith.constant 0 : i32
    %2 = arith.cmpi ne, %1, %c0_i32_0 : i32
    scf.if %2 {
      %cst_16 = arith.constant 0.000000e+00 : f32
      %23 = vector.broadcast %cst_16 : f32 to vector<16x256xf32>
      %c0_17 = arith.constant 0 : index
      %c0_18 = arith.constant 0 : index
      %24 = vector.load %arg7[%c0_17, %c0_18] : memref<16x256xf32, #tpu.memory_space<vmem>>, vector<16x256xf32>
      tpu.vector_store %arg7[%c0_17, %c0_18], %23 {strides = array<i32>} : memref<16x256xf32, #tpu.memory_space<vmem>>, vector<16x256xf32>,
    } else {
    }
    %c0 = arith.constant 0 : index
    %c0_1 = arith.constant 0 : index
    %3 = vector.load %arg2[%c0, %c0_1] : memref<16x256xf32, #tpu.memory_space<vmem>>, vector<16x256xf32>
    %c0_2 = arith.constant 0 : index
    %c0_3 = arith.constant 0 : index
    %4 = vector.load %arg3[%c0_2, %c0_3] : memref<256x256xf32, #tpu.memory_space<vmem>>, vector<256x256xf32>
    %cst = arith.constant dense<0.000000e+00> : vector<16x256xf32>
    %5 = tpu.matmul %3, %4, %cst {dimension_numbers = #tpu.dot_dimension_numbers<[1], [0], [0], [1], [0, 0, 1, 1], [], []>} : vector<16x256xf32>, vector<256x256xf32>, vector<16x256xf32> -> vector<16x256xf32>
    %c0_4 = arith.constant 0 : index
    %c0_5 = arith.constant 0 : index
    %6 = vector.load %arg4[%c0_4, %c0_5] : memref<256x256xf32, #tpu.memory_space<vmem>>, vector<256x256xf32>
    %cst_6 = arith.constant dense<0.000000e+00> : vector<16x256xf32>
    %7 = tpu.matmul %3, %6, %cst_6 {dimension_numbers = #tpu.dot_dimension_numbers<[1], [0], [0], [1], [0, 0, 1, 1], [], []>} : vector<16x256xf32>, vector<256x256xf32>, vector<16x256xf32> -> vector<16x256xf32>
    %8 = arith.negf %5 : vector<16x256xf32>
    %9 = math.exp %8 : vector<16x256xf32>
    %cst_7 = arith.constant 1.000000e+00 : f32
    %10 = vector.broadcast %cst_7 : f32 to vector<16x256xf32>
    %11 = arith.addf %10, %9 : vector<16x256xf32>
    %12 = arith.divf %10, %11 : vector<16x256xf32>
    %13 = arith.mulf %5, %12 : vector<16x256xf32>
    %14 = arith.mulf %13, %7 : vector<16x256xf32>
    %c0_8 = arith.constant 0 : index
    %c0_9 = arith.constant 0 : index
    %15 = vector.load %arg7[%c0_8, %c0_9] : memref<16x256xf32, #tpu.memory_space<vmem>>, vector<16x256xf32>
    %c0_10 = arith.constant 0 : index
    %c0_11 = arith.constant 0 : index
    %16 = vector.load %arg5[%c0_10, %c0_11] : memref<256x256xf32, #tpu.memory_space<vmem>>, vector<256x256xf32>
    %cst_12 = arith.constant dense<0.000000e+00> : vector<16x256xf32>
    %17 = tpu.matmul %14, %16, %cst_12 {dimension_numbers = #tpu.dot_dimension_numbers<[1], [0], [0], [1], [0, 0, 1, 1], [], []>} : vector<16x256xf32>, vector<256x256xf32>, vector<16x256xf32> -> vector<16x256xf32>
    %18 = arith.addf %15, %17 : vector<16x256xf32>
    %c0_13 = arith.constant 0 : index
    %c0_14 = arith.constant 0 : index
    %19 = vector.load %arg7[%c0_13, %c0_14] : memref<16x256xf32, #tpu.memory_space<vmem>>, vector<16x256xf32>
    tpu.vector_store %arg7[%c0_13, %c0_14], %18 {strides = array<i32>} : memref<16x256xf32, #tpu.memory_space<vmem>>, vector<16x256xf32>,
    %c1_i32 = arith.constant 1 : i32
    %20 = arith.cmpi eq, %arg1, %c1_i32 : i32
    %21 = arith.extui %20 : i1 to i32
    %c0_i32_15 = arith.constant 0 : i32
    %22 = arith.cmpi ne, %21, %c0_i32_15 : i32
    scf.if %22 {
      %c0_16 = arith.constant 0 : index
      %c0_17 = arith.constant 0 : index
      %23 = vector.load %arg7[%c0_16, %c0_17] : memref<16x256xf32, #tpu.memory_space<vmem>>, vector<16x256xf32>
      %c0_18 = arith.constant 0 : index
      %c0_19 = arith.constant 0 : index
      %24 = vector.load %arg6[%c0_18, %c0_19] : memref<16x256xf32, #tpu.memory_space<vmem>>, vector<16x256xf32>
      tpu.vector_store %arg6[%c0_18, %c0_19], %23 {strides = array<i32>} : memref<16x256xf32, #tpu.memory_space<vmem>>, vector<16x256xf32>,
    } else {
    }
    return
  }
  func.func @transform_0(%arg0: i32, %arg1: i32) -> (i32, i32) {
    %c0_i32 = arith.constant 0 : i32
    %c0_i32_0 = arith.constant 0 : i32
    return %arg0, %c0_i32 : i32, i32
  }
  func.func @transform_1(%arg0: i32, %arg1: i32) -> (i32, i32) {
    %c0_i32 = arith.constant 0 : i32
    %c0_i32_0 = arith.constant 0 : i32
    return %c0_i32, %arg1 : i32, i32
  }
  func.func @transform_2(%arg0: i32, %arg1: i32) -> (i32, i32) {
    %c0_i32 = arith.constant 0 : i32
    %c0_i32_0 = arith.constant 0 : i32
    return %c0_i32, %arg1 : i32, i32
  }
  func.func @transform_3(%arg0: i32, %arg1: i32) -> (i32, i32) {
    %c0_i32 = arith.constant 0 : i32
    %c0_i32_0 = arith.constant 0 : i32
    return %arg1, %c0_i32 : i32, i32
  }
  func.func @transform_4(%arg0: i32, %arg1: i32) -> (i32, i32) {
    %c0_i32 = arith.constant 0 : i32
    %c0_i32_0 = arith.constant 0 : i32
    return %arg0, %c0_i32 : i32, i32
  }
}

</mosaic_0001>

<bundles_post_ra>
// kernel: swiglu_pallas.1
= control target key start
LH: loop header
LB: loop body
LE: loop exit
PB: predicated region body
PF: predicated region fallthrough
CT: control target
= control target key end

     0   :  { %s2037_s0 = inlined_call_operand.hbm [shape: f32[16,256], index: 0, kind: input, shape index: {}]   ;;  %s2038_s1 = inlined_call_operand.hbm [shape: f32[256,512], index: 1, kind: input, shape index: {}]   ;;  %s2039_s2 = inlined_call_operand.hbm [shape: f32[256,512], index: 2, kind: input, shape index: {}]   ;;  %s2040_s3 = inlined_call_operand.hbm [shape: f32[512,256], index: 3, kind: input, shape index: {}]   ;;  %s2041_s4 = inlined_call_operand.hbm [shape: f32[16,256], index: 4, kind: output, shape index: {}]  }
   0x1   :  { %2053 = sst [smem:[#allocation16_spill]] %s2038_s1 }
   0x2   :  { %2054 = sst [smem:[#allocation17_spill]] %s2039_s2 }
   0x3   :  { %9 = vsyncpa [#allocation4], 0 }
   0x4   :  { %10 = vsyncpa [#allocation7], 0 }
   0x5   :  { %12 = vsyncpa [#allocation7 + $0x1], 0 }
   0x6   :  { %13 = vsyncpa [#allocation10], 0 }
   0x7   :  { %15 = vsyncpa [#allocation10 + $0x1], 0 }
   0x8   :  { %16 = vsyncpa [#allocation5], 0  ;;  %s1556_s15 = smov 0   ;;  %s1558_s16 = smov 0  }
   0x9   :  { %s1560_s17 = smov 0   ;;  %s1562_s18 = smov 0  }
   0xa   :  { %s1564_s19 = smov 0   ;;  %s1566_s20 = smov 0  }
   0xb LB: > { %s31_s21 = sadd.s32 1, %s1514_s19  ;;  %s67_s22 = sadd.s32 1, %s1506_s17  ;;  %s1518_s20 = sphi %s1566_s20, %s22_s20   ;;  %s1514_s19 = sphi %s1564_s19, %s2077_s19   ;;  %s1510_s18 = sphi %s1562_s18, %s2076_s18   ;;  %s1506_s17 = sphi %s1560_s17, %s2075_s17   ;;  %s1502_s16 = sphi %s1558_s16, %s2074_s16   ;;  %s1498_s15 = sphi %s1556_s15, %s2073_s15  }
   0xc   : > { %p32_p0 = scmp.ge.s32.totalorder %s31_s21, 2  ;;  %p74_p1 = scmp.ne.s32.totalorder %s1506_s17, %s1502_s16 }
   0xd   : > { %p75_p2 = scmp.eq.s32.totalorder %s1518_s20, 0  ;;  %p1236_p5 = scmp.lt.s32.totalorder %s1518_s20, 2 }
   0xe   : > { %s2079_s21 = smov (%p32_p0, %s31_s21), 0  ;;  %s199_s25 = sand.u32 1, %s1518_s20  }
   0xf   : > { %p1593_p3 = por %p75_p2, %p74_p1  ;;  %s64_s24 = ssub.s32 %s1514_s19, %s2079_s21 }
  0x10   : > { %p65_p4 = scmp.eq.s32.totalorder %s64_s24, 0  ;;  %s2042_s26 = sand.u32 1, %s1506_s17  }
  0x11   : > { %s1607_s28 = sshll.u32 %s2042_s26, 9  ;;  %s979_s29 = sshll.u32 %s1514_s19, 8 }
  0x12   : > { %s1603_s27 = scalar_select %p65_p4, %s1506_s17, %s67_s22  }
  0x13   : > { %s2056_s1 = sld [smem:[#allocation16_spill]]  ;;  %s203_s7 = scalar_lea.vmem [#allocation6], %s1607_s28 }
  0x14   : > { %s210_s8 = sshll.u32 %s203_s7, 4  ;;  %p1620_p6 = pnand %p1236_p5, %p1593_p3  ;;  %s1616_s8 = int_to_ptr.vmem [resolvable:$true] %s210_s8 }
  0x15   : > { %s2058_s2 = sld [smem:[#allocation17_spill]]  ;;  %s1629_s13 = scalar_lea.sflag [#allocation7], %s199_s25 }
  0x16   : > { %s2057_s9 = scalar_select %p1620_p6, 1, 0 }
  0x17   : > { %p1635_p8 = pneg %p1620_p6 }
  0x19   : > { %s1613_s6 = scalar_lea.hbm %s2056_s1, %s979_s29  ;;  %s1317_s30 = scalar_lea.hbm %s2056_s1, 16384 }
  0x1a   : > { %s1312_s14 = scalar_lea.hbm %s1613_s6, 8192  ;;  %p1318_p11 = scmp.lt.u32.totalorder %s1613_s6, %s2056_s1 }
  0x1b   : > { %s1627_s12 = scalar_lea.hbm %s2058_s2, %s979_s29  ;;  %p1313_p7 = scmp.ne.s32.totalorder %s1613_s6, %s1312_s14 }
  0x1c   : > { %s2059_s22 = scalar_select %p1635_p8, 1, 0 }
  0x1d   : > { %p1315_p9 = pnand %p1635_p8, %p1313_p7  ;;  %p1319_p12 = scmp.lt.u32.totalorder %s1317_s30, %s1312_s14 }
  0x1e   : > { %p1321_p0 = scmp.lt.u32.totalorder %s1312_s14, %s1613_s6 }
  0x1f   : > { %p1316_p10 = pneg %p1315_p9  ;;  %p1320_p13 = por %p1319_p12, %p1318_p11 }
  0x21   : > { %p1322_p1 = por %p1321_p0, %p1320_p13 }
  0x23   : > { %p1323_p2 = pnand %p1322_p1, %p1316_p10 }
  0x25   : > { %1326 = shalt.err (!%p1323_p2)
}
  0x26   : > { %s1327_s25 = scalar_lea.vmem %s1616_s8, 8192  ;;  %s1520_s7 = smov [#allocation6]  }
  0x27   : > { %p1328_p3 = scmp.ne.s32.totalorder %s1616_s8, %s1327_s25  ;;  %s1332_s10 = sshll.u32 %s1520_s7, 4  ;;  %s1333_s10 = int_to_ptr.vmem [resolvable:$false] %s1332_s10 }
  0x28   : > { %s1334_s11 = scalar_lea.vmem %s1333_s10, 16384  ;;  %p1335_p7 = scmp.lt.s32.totalorder %s1616_s8, %s1333_s10 }
  0x29   : > { %p1330_p4 = pnand %p1328_p3, %p1635_p8  ;;  %p1336_p9 = scmp.lt.s32.totalorder %s1334_s11, %s1327_s25 }
  0x2b   : > { %p1331_p5 = pneg %p1330_p4  ;;  %p1337_p11 = por %p1336_p9, %p1335_p7 }
  0x2d   : > { %p1338_p12 = pnand %p1337_p11, %p1331_p5 }
  0x2f   : > { %1341 = shalt.err (!%p1338_p12)
}
  0x30   : > { %s2043_s14 = smov 512   ;;  %s2044_s23 = smov 256  }
  0x31   : > { %s1523_s24 = smov 16   ;;  %s1663_s30 = sadd.s32 4294967295, %s1518_s20  }
  0x32   : > { %1228 = dma.hbm_to_vmem [thread:$0]  (!%p1620_p6), %s1613_s6, 8192, %s1616_s8, %s1629_s13, %s2043_s14, %s2044_s23, %s1523_s24  }
  0x33   : > { %p80_p10 = scmp.ne.s32.totalorder %s1502_s16, %s1498_s15  ;;  %p2046_p13 = scmp.eq.s32.totalorder %s1663_s30, 0 }
  0x34   : > { %p951_p0 = scmp.ge.s32.totalorder %s1518_s20, 1  ;;  %p169_p1 = scmp.lt.s32.totalorder %s1518_s20, 3 }
  0x35   : > { %p1672_p2 = por %p2046_p13, %p80_p10  ;;  %s1524_s8 = smov [#allocation3]  }
  0x36   : > { %p1676_p3 = pnand %p951_p0, %p169_p1  ;;  %s185_s29 = sshll.u32 %s1524_s8, 4  ;;  %s1682_s29 = int_to_ptr.vmem [resolvable:$true] %s185_s29 }
  0x37   : > { %s2060_s5 = scalar_select %p1672_p2, 1, 0 }
  0x38   : > { %s2061_s6 = scalar_select %p1676_p3, 1, 0 }
  0x39   : > { %p1221_p4 = pneg %p1676_p3  ;;  %s224_s15 = scalar_lea.vmem [#allocation8], %s1607_s28 }
  0x3a   : > { %s231_s25 = sshll.u32 %s224_s15, 4  ;;  %s1342_s10 = scalar_lea.hbm %s1627_s12, 8192  ;;  %s1691_s25 = int_to_ptr.vmem [resolvable:$true] %s231_s25 }
  0x3b   : > { %p1687_p5 = pnand %p1221_p4, %p2046_p13  ;;  %p1343_p7 = scmp.ne.s32.totalorder %s1627_s12, %s1342_s10 }
  0x3c   : > { %s1347_s26 = scalar_lea.hbm %s2058_s2, 16384  ;;  %p1348_p12 = scmp.lt.u32.totalorder %s1627_s12, %s2058_s2 }
  0x3d   : > { %s2062_s7 = scalar_select %p1687_p5, 1, 0 }
  0x3e   : > { %p1345_p9 = pnand %p1343_p7, %p1635_p8  ;;  %p1349_p10 = scmp.lt.u32.totalorder %s1347_s26, %s1342_s10 }
  0x3f   : > { %p1351_p1 = scmp.lt.u32.totalorder %s1342_s10, %s1627_s12 }
  0x40   : > { %p1346_p11 = pneg %p1345_p9  ;;  %p1350_p0 = por %p1349_p10, %p1348_p12 }
  0x42   : > { %p1352_p4 = por %p1351_p1, %p1350_p0 }
  0x44   : > { %p1353_p13 = pnand %p1352_p4, %p1346_p11 }
  0x46   : > { %1356 = shalt.err (!%p1353_p13)
}
  0x47   : > { %s1357_s15 = scalar_lea.vmem %s1691_s25, 8192  ;;  %s1525_s11 = smov [#allocation8]  }
  0x48   : > { %p1358_p7 = scmp.ne.s32.totalorder %s1691_s25, %s1357_s15  ;;  %s1362_s8 = sshll.u32 %s1525_s11, 4  ;;  %s1363_s8 = int_to_ptr.vmem [resolvable:$false] %s1362_s8 }
  0x49   : > { %s1364_s14 = scalar_lea.vmem %s1363_s8, 16384  ;;  %p1365_p3 = scmp.lt.s32.totalorder %s1691_s25, %s1363_s8 }
  0x4a   : > { %p1360_p9 = pnand %p1358_p7, %p1635_p8  ;;  %p1366_p5 = scmp.lt.s32.totalorder %s1364_s14, %s1357_s15 }
  0x4c   : > { %p1361_p2 = pneg %p1360_p9  ;;  %p1367_p12 = por %p1366_p5, %p1365_p3 }
  0x4e   : > { %p1368_p10 = pnand %p1367_p12, %p1361_p2 }
  0x50   : > { %1371 = shalt.err (!%p1368_p10)
}
  0x51   : > { %s2063_s26 = smov 256   ;;  %s2064_s23 = smov 512  }
  0x52   : > { %1231 = dma.hbm_to_vmem [thread:$0]  (!%p1620_p6), %s1627_s12, 8192, %s1691_s25, %s1629_s13, %s2064_s23, %s2063_s26, %s1523_s24  }
  0x53   : > { %s1372_s11 = scalar_lea.hbm %s2037_s0, 512  ;;  %p2065_p2 = scmp.ne.s32.totalorder %s2062_s7, 0 }
  0x54   : > { %p1373_p13 = scmp.ne.s32.totalorder %s2037_s0, %s1372_s11  ;;  %p1379_p0 = scmp.lt.u32.totalorder %s1372_s11, %s2037_s0 }
  0x55   : > { %p1374_p3 = pneg %p2065_p2 }
  0x57   : > { %p1375_p5 = pnand %p1374_p3, %p1373_p13 }
  0x59   : > { %p1376_p11 = pneg %p1375_p5 }
  0x5b   : > { %p1381_p1 = pnand %p1379_p0, %p1376_p11 }
  0x5d   : > { %1384 = shalt.err (!%p1381_p1)
}
  0x5e   : > { %s1385_s12 = scalar_lea.vmem %s1682_s29, 512  ;;  %p1393_p12 = scmp.lt.s32.totalorder %s1682_s29, %s1682_s29 }
  0x5f   : > { %p1386_p4 = scmp.ne.s32.totalorder %s1682_s29, %s1385_s12  ;;  %p1394_p10 = scmp.lt.s32.totalorder %s1385_s12, %s1385_s12 }
  0x61   : > { %p1388_p7 = pnand %p1386_p4, %p1374_p3  ;;  %p1395_p6 = por %p1394_p10, %p1393_p12 }
  0x63   : > { %p1389_p9 = pneg %p1388_p7 }
  0x65   : > { %p1396_p8 = pnand %p1395_p6, %p1389_p9 }
  0x67   : > { %1399 = shalt.err (!%p1396_p8)
}
  0x68   : > { %1224 = dma.hbm_to_vmem [thread:$0]  (!%p2065_p2), %s2037_s0, 512, %s1682_s29, [#allocation4], %s2063_s26, %s2063_s26, %s1523_s24  }
  0x69   : > { %s982_s13 = sshll.u32 %s1514_s19, 13  ;;  %s245_s25 = scalar_lea.vmem [#allocation9], %s1607_s28 }
  0x6a   : > { %s253_s23 = sshll.u32 %s245_s25, 4  ;;  %s1747_s8 = scalar_lea.hbm %s2040_s3, %s982_s13  ;;  %s1749_s23 = int_to_ptr.vmem [resolvable:$true] %s253_s23 }
  0x6b   : > { %s2066_s7 = sand.u32 1, %s1506_s17   ;;  %s1400_s14 = scalar_lea.hbm %s1747_s8, 8192 }
  0x6c   : > { %s1753_s15 = scalar_lea.sflag [#allocation10], %s2066_s7  ;;  %p1401_p6 = scmp.ne.s32.totalorder %s1747_s8, %s1400_s14 }
  0x6d   : > { %p2067_p8 = scmp.ne.s32.totalorder %s2059_s22, 0  ;;  %s1405_s12 = scalar_lea.hbm %s2040_s3, 16384 }
  0x6e   : > { %p1406_p3 = scmp.lt.u32.totalorder %s1747_s8, %s2040_s3  ;;  %p1407_p5 = scmp.lt.u32.totalorder %s1405_s12, %s1400_s14 }
  0x6f   : > { %p1403_p13 = pnand %p1401_p6, %p2067_p8  ;;  %p1409_p0 = scmp.lt.u32.totalorder %s1400_s14, %s1747_s8 }
  0x70   : > { %p1408_p11 = por %p1407_p5, %p1406_p3 }
  0x71   : > { %p1404_p2 = pneg %p1403_p13 }
  0x72   : > { %p1410_p1 = por %p1409_p0, %p1408_p11 }
  0x74   : > { %p1411_p4 = pnand %p1410_p1, %p1404_p2 }
  0x76   : > { %1414 = shalt.err (!%p1411_p4)
}
  0x77   : > { %s1415_s13 = scalar_lea.vmem %s1749_s23, 8192  ;;  %s1526_s25 = smov [#allocation9]  }
  0x78   : > { %p1416_p7 = scmp.ne.s32.totalorder %s1749_s23, %s1415_s13  ;;  %s1420_s10 = sshll.u32 %s1526_s25, 4  ;;  %s1421_s10 = int_to_ptr.vmem [resolvable:$false] %s1420_s10 }
  0x79   : > { %s1422_s11 = scalar_lea.vmem %s1421_s10, 16384  ;;  %p1423_p10 = scmp.lt.s32.totalorder %s1749_s23, %s1421_s10 }
  0x7a   : > { %p1418_p9 = pnand %p1416_p7, %p2067_p8  ;;  %p1424_p6 = scmp.lt.s32.totalorder %s1422_s11, %s1415_s13 }
  0x7c   : > { %p1419_p12 = pneg %p1418_p9  ;;  %p1425_p13 = por %p1424_p6, %p1423_p10 }
  0x7e   : > { %p1426_p3 = pnand %p1425_p13, %p1419_p12 }
  0x80   : > { %1429 = shalt.err (!%p1426_p3)
}
  0x81   : > { %p2068_p2 = scmp.ne.s32.totalorder %s2057_s9, 0  ;;  %p2069_p8 = scmp.ne.s32.totalorder %s2061_s6, 0 }
  0x82   : > { %p2070_p5 = scmp.eq.s32.totalorder (!%p2069_p8), %s1663_s30, 0 }
  0x83   : > { %1234 = dma.hbm_to_vmem [thread:$0]  (!%p2068_p2), %s1747_s8, 8192, %s1749_s23, %s1753_s15, %s2063_s26, %s2063_s26, %s1523_s24  }
  0x84   : > { %265 = sbr.rel (%p2069_p8) target bundleno = 722 (0x2d2), region = 36 }
  0x8b   : > { %1481 = dma.done.wait (%p2070_p5), [#allocation4], 512   ;;  %p2071_p11 = pmov %p2070_p5 }
  0x8c   : > { %s271_s9 = sand.u32 1, %s1663_s30   ;;  %s273_s22 = sand.u32 1, %s1502_s16  }
  0x8d   : > { %1483 = vsyncadd (%p2071_p11), [#allocation4], 4294966784  ;;  %s966_s7 = sshll.u32 %s273_s22, 9  ;;  %s272_s14 = scalar_lea.sflag [#allocation7], %s271_s9 }
  0x8e   : > { %s1788_s28 = scalar_lea.vmem [#allocation6], %s966_s7  ;;  %p2072_p0 = scmp.ne.s32.totalorder %s2060_s5, 0 }
  0x90   : > { %1485 = dma.done.wait (%p2072_p0), %s272_s14, 16384  }
  0x91   : > { %1487 = vsyncadd (%p2072_p0), %s272_s14, 4294950912  ;;  %s1794_s24 = scalar_lea.vmem [#allocation8], %s966_s7  ;;  %s290_s6 = scalar_lea.sflag [#allocation10], %s273_s22 }
  0x92   : > { %s1796_s26 = scalar_lea.vmem [#allocation9], %s966_s7 }
  0x93   : > { %1489 = dma.done.wait (%p2072_p0), %s290_s6, 8192  }
  0x94   : > { %1491 = vsyncadd (%p2072_p0), %s290_s6, 4294959104  ;;  %p969_p1 = scmp.ne.s32.totalorder %s1510_s18, 0 }
  0x95   : > { %v1527_v0 = vmov (!%p969_p1), 0.0  }
  0x96   : > { %331 = sbr.rel (%p969_p1) target bundleno = 157 (0x9d), region = 56  ;;  %332 = vst [vmem:[#allocation2] sm:$0xff] (!%p969_p1), %v1527_v0  ;;  %333 = vst [vmem:[#allocation2 + $0x8] sm:$0xff] (!%p969_p1), %v1527_v0 }
  0x97   : > { %334 = vst [vmem:[#allocation2 + $0x10] sm:$0xff] (!%p969_p1), %v1527_v0  ;;  %335 = vst [vmem:[#allocation2 + $0x18] sm:$0xff] (!%p969_p1), %v1527_v0 }
  0x9d PF: > { %v341_v1 = vld [vmem:[%s1788_s28 + $0x8] sm:$0xff]  ;;  %v343_v2 = vld [vmem:[%s1788_s28 + $0x18] sm:$0xff]  ;;  %v340_v3 = vld [vmem:[%s1788_s28] sm:$0xff]  ;;  %p974_p4 = scmp.ne.s32.totalorder %s1510_s18, 1 }
  0x9e   : > { %v983_v4 = vpack.c.bf16 %v343_v2, %v341_v1  ;;  %v342_v5 = vld [vmem:[%s1788_s28 + $0x10] sm:$0xff]  ;;  %v345_v6 = vld [vmem:[%s1788_s28 + $0x28] sm:$0xff]  ;;  %v347_v7 = vld [vmem:[%s1788_s28 + $0x38] sm:$0xff] }
  0x9f   : > { %v985_v8 = vpack.c.bf16 %v342_v5, %v340_v3  ;;  %v987_v9 = vpack.c.bf16 %v347_v7, %v345_v6  ;;  %v344_v10 = vld [vmem:[%s1788_s28 + $0x20] sm:$0xff]  ;;  %v346_v11 = vld [vmem:[%s1788_s28 + $0x30] sm:$0xff]  ;;  %v349_v12 = vld [vmem:[%s1788_s28 + $0x48] sm:$0xff] }
  0xa0   : > { %984 = vmatprep.subr.bf16.mxu0 %v983_v4  ;;  %v351_v13 = vld [vmem:[%s1788_s28 + $0x58] sm:$0xff]  ;;  %v989_v14 = vpack.c.bf16 %v346_v11, %v344_v10  ;;  %v348_v16 = vld [vmem:[%s1788_s28 + $0x40] sm:$0xff]  ;;  %v350_v17 = vld [vmem:[%s1788_s28 + $0x50] sm:$0xff] }
  0xa1   : > { %986 = vmatpush1.bf16.msra.mxu0 %v985_v8  ;;  %v991_v15 = vpack.c.bf16 %v351_v13, %v349_v12  ;;  %v353_v18 = vld [vmem:[%s1788_s28 + $0x68] sm:$0xff]  ;;  %v355_v19 = vld [vmem:[%s1788_s28 + $0x78] sm:$0xff]  ;;  %v993_v20 = vpack.c.bf16 %v350_v17, %v348_v16  ;;  %v352_v21 = vld [vmem:[%s1788_s28 + $0x60] sm:$0xff] }
  0xa2   : > { %988 = vmatprep.subr.bf16.mxu0 %v987_v9  ;;  %v995_v22 = vpack.c.bf16 %v355_v19, %v353_v18  ;;  %v354_v23 = vld [vmem:[%s1788_s28 + $0x70] sm:$0xff]  ;;  %v482_v24 = vld [vmem:[%s1794_s24 + $0x8] sm:$0xff]  ;;  %v484_v25 = vld [vmem:[%s1794_s24 + $0x18] sm:$0xff] }
  0xa3   : > { %v357_v26 = vld [vmem:[%s1788_s28 + $0x88] sm:$0xff]  ;;  %v359_v27 = vld [vmem:[%s1788_s28 + $0x98] sm:$0xff]  ;;  %v1047_v28 = vpack.c.bf16 %v484_v25, %v482_v24  ;;  %v481_v29 = vld [vmem:[%s1794_s24] sm:$0xff]  ;;  %v997_v31 = vpack.c.bf16 %v354_v23, %v352_v21 }
  0xa4   : > { %v483_v30 = vld [vmem:[%s1794_s24 + $0x10] sm:$0xff]  ;;  %v356_v32 = vld [vmem:[%s1788_s28 + $0x80] sm:$0xff]  ;;  %v486_v34 = vld [vmem:[%s1794_s24 + $0x28] sm:$0xff]  ;;  %v999_v36 = vpack.c.bf16 %v359_v27, %v357_v26 }
  0xa5   : > { %990 = vmatpush1.bf16.msra.mxu0 %v989_v14  ;;  %1048 = vmatprep.subr.bf16.mxu1 %v1047_v28  ;;  %v1049_v33 = vpack.c.bf16 %v483_v30, %v481_v29  ;;  %v488_v35 = vld [vmem:[%s1794_s24 + $0x38] sm:$0xff]  ;;  %v358_v37 = vld [vmem:[%s1788_s28 + $0x90] sm:$0xff]  ;;  %v485_v39 = vld [vmem:[%s1794_s24 + $0x20] sm:$0xff] }
  0xa6   : > { %992 = vmatprep.subr.bf16.mxu0 %v991_v15  ;;  %v1051_v38 = vpack.c.bf16 %v488_v35, %v486_v34  ;;  %v487_v40 = vld [vmem:[%s1794_s24 + $0x30] sm:$0xff]  ;;  %v361_v41 = vld [vmem:[%s1788_s28 + $0xa8] sm:$0xff]  ;;  %v363_v42 = vld [vmem:[%s1788_s28 + $0xb8] sm:$0xff]  ;;  %v1001_v46 = vpack.c.bf16 %v358_v37, %v356_v32 }
  0xa7   : > { %1050 = vmatpush1.bf16.msra.mxu1 %v1049_v33  ;;  %v1053_v43 = vpack.c.bf16 %v487_v40, %v485_v39  ;;  %v490_v44 = vld [vmem:[%s1794_s24 + $0x48] sm:$0xff]  ;;  %v492_v45 = vld [vmem:[%s1794_s24 + $0x58] sm:$0xff]  ;;  %v360_v47 = vld [vmem:[%s1788_s28 + $0xa0] sm:$0xff]  ;;  %v1003_v51 = vpack.c.bf16 %v363_v42, %v361_v41 }
  0xa8   : > { %1052 = vmatprep.subr.bf16.mxu1 %v1051_v38  ;;  %v1055_v48 = vpack.c.bf16 %v492_v45, %v490_v44  ;;  %v489_v49 = vld [vmem:[%s1794_s24 + $0x40] sm:$0xff]  ;;  %v491_v50 = vld [vmem:[%s1794_s24 + $0x50] sm:$0xff]  ;;  %v494_v53 = vld [vmem:[%s1794_s24 + $0x68] sm:$0xff] }
  0xa9   : > { %994 = vmatpush1.bf16.msra.mxu0 %v993_v20  ;;  %v362_v52 = vld [vmem:[%s1788_s28 + $0xb0] sm:$0xff]  ;;  %v496_v54 = vld [vmem:[%s1794_s24 + $0x78] sm:$0xff]  ;;  %v365_v55 = vld [vmem:[%s1788_s28 + $0xc8] sm:$0xff]  ;;  %v1057_v57 = vpack.c.bf16 %v491_v50, %v489_v49 }
  0xaa   : > { %996 = vmatprep.subr.bf16.mxu0 %v995_v22  ;;  %v367_v56 = vld [vmem:[%s1788_s28 + $0xd8] sm:$0xff]  ;;  %v1059_v58 = vpack.c.bf16 %v496_v54, %v494_v53  ;;  %v493_v59 = vld [vmem:[%s1794_s24 + $0x60] sm:$0xff]  ;;  %v495_v60 = vld [vmem:[%s1794_s24 + $0x70] sm:$0xff]  ;;  %v1005_v61 = vpack.c.bf16 %v362_v52, %v360_v47 }
  0xab   : > { %1054 = vmatpush1.bf16.msra.mxu1 %v1053_v43  ;;  %v498_v62 = vld [vmem:[%s1794_s24 + $0x88] sm:$0xff]  ;;  %v500_v63 = vld [vmem:[%s1794_s24 + $0x98] sm:$0xff]  ;;  %v1007_v0 = vpack.c.bf16 %v367_v56, %v365_v55  ;;  %v364_v1 = vld [vmem:[%s1788_s28 + $0xc0] sm:$0xff]  ;;  %v1061_v5 = vpack.c.bf16 %v495_v60, %v493_v59 }
  0xac   : > { %1056 = vmatprep.subr.bf16.mxu1 %v1055_v48  ;;  %v366_v2 = vld [vmem:[%s1788_s28 + $0xd0] sm:$0xff]  ;;  %v369_v3 = vld [vmem:[%s1788_s28 + $0xe8] sm:$0xff]  ;;  %v371_v4 = vld [vmem:[%s1788_s28 + $0xf8] sm:$0xff]  ;;  %v1063_v6 = vpack.c.bf16 %v500_v63, %v498_v62 }
  0xad   : > { %998 = vmatpush1.bf16.msra.mxu0 %v997_v31  ;;  %v497_v7 = vld [vmem:[%s1794_s24 + $0x80] sm:$0xff]  ;;  %v499_v8 = vld [vmem:[%s1794_s24 + $0x90] sm:$0xff]  ;;  %v1009_v9 = vpack.c.bf16 %v366_v2, %v364_v1  ;;  %v502_v10 = vld [vmem:[%s1794_s24 + $0xa8] sm:$0xff]  ;;  %v1011_v12 = vpack.c.bf16 %v371_v4, %v369_v3 }
  0xae   : > { %1000 = vmatprep.subr.bf16.mxu0 %v999_v36  ;;  %v504_v11 = vld [vmem:[%s1794_s24 + $0xb8] sm:$0xff]  ;;  %v368_v13 = vld [vmem:[%s1788_s28 + $0xe0] sm:$0xff]  ;;  %v370_v14 = vld [vmem:[%s1788_s28 + $0xf0] sm:$0xff]  ;;  %v1065_v17 = vpack.c.bf16 %v499_v8, %v497_v7 }
  0xaf   : > { %1058 = vmatpush1.bf16.msra.mxu1 %v1057_v57  ;;  %v373_v15 = vld [vmem:[%s1788_s28 + $0x108] sm:$0xff]  ;;  %v375_v16 = vld [vmem:[%s1788_s28 + $0x118] sm:$0xff]  ;;  %v1067_v18 = vpack.c.bf16 %v504_v11, %v502_v10  ;;  %v501_v19 = vld [vmem:[%s1794_s24 + $0xa0] sm:$0xff]  ;;  %v1013_v21 = vpack.c.bf16 %v370_v14, %v368_v13 }
  0xb0   : > { %1060 = vmatprep.subr.bf16.mxu1 %v1059_v58  ;;  %v503_v20 = vld [vmem:[%s1794_s24 + $0xb0] sm:$0xff]  ;;  %v506_v22 = vld [vmem:[%s1794_s24 + $0xc8] sm:$0xff]  ;;  %v508_v23 = vld [vmem:[%s1794_s24 + $0xd8] sm:$0xff]  ;;  %v1015_v24 = vpack.c.bf16 %v375_v16, %v373_v15 }
  0xb1   : > { %1002 = vmatpush1.bf16.msra.mxu0 %v1001_v46  ;;  %v372_v25 = vld [vmem:[%s1788_s28 + $0x100] sm:$0xff]  ;;  %v374_v26 = vld [vmem:[%s1788_s28 + $0x110] sm:$0xff]  ;;  %v377_v27 = vld [vmem:[%s1788_s28 + $0x128] sm:$0xff]  ;;  %v1069_v29 = vpack.c.bf16 %v503_v20, %v501_v19  ;;  %v1071_v30 = vpack.c.bf16 %v508_v23, %v506_v22 }
  0xb2   : > { %1004 = vmatprep.subr.bf16.mxu0 %v1003_v51  ;;  %v379_v28 = vld [vmem:[%s1788_s28 + $0x138] sm:$0xff]  ;;  %v505_v31 = vld [vmem:[%s1794_s24 + $0xc0] sm:$0xff]  ;;  %v507_v32 = vld [vmem:[%s1794_s24 + $0xd0] sm:$0xff]  ;;  %v1017_v33 = vpack.c.bf16 %v374_v26, %v372_v25 }
  0xb3   : > { %1062 = vmatpush1.bf16.msra.mxu1 %v1061_v5  ;;  %v510_v34 = vld [vmem:[%s1794_s24 + $0xe8] sm:$0xff]  ;;  %v512_v35 = vld [vmem:[%s1794_s24 + $0xf8] sm:$0xff]  ;;  %v1019_v36 = vpack.c.bf16 %v379_v28, %v377_v27  ;;  %v376_v37 = vld [vmem:[%s1788_s28 + $0x120] sm:$0xff]  ;;  %v1073_v42 = vpack.c.bf16 %v507_v32, %v505_v31 }
  0xb4   : > { %1064 = vmatprep.subr.bf16.mxu1 %v1063_v6  ;;  %v378_v38 = vld [vmem:[%s1788_s28 + $0x130] sm:$0xff]  ;;  %v337_v39 = vld [vmem:[#allocation3 + $0x8] sm:$0xff]  ;;  %v383_v41 = vld [vmem:[%s1788_s28 + $0x158] sm:$0xff]  ;;  %v1075_v43 = vpack.c.bf16 %v512_v35, %v510_v34 }
  0xb5   : > { %1006 = vmatpush1.bf16.msra.mxu0 %v1005_v61  ;;  %v381_v40 = vld [vmem:[%s1788_s28 + $0x148] sm:$0xff]  ;;  %468 = vmatprep.mubr.f32.mxu0 %v337_v39  ;;  %v509_v44 = vld [vmem:[%s1794_s24 + $0xe0] sm:$0xff]  ;;  %v511_v45 = vld [vmem:[%s1794_s24 + $0xf0] sm:$0xff]  ;;  %v1021_v46 = vpack.c.bf16 %v378_v38, %v376_v37 }
  0xb6   : > { %1008 = vmatprep.subr.bf16.mxu0 %v1007_v0  ;;  %609 = vmatprep.mubr.f32.mxu1 %v337_v39  ;;  %v514_v47 = vld [vmem:[%s1794_s24 + $0x108] sm:$0xff]  ;;  %v516_v48 = vld [vmem:[%s1794_s24 + $0x118] sm:$0xff]  ;;  %v1023_v49 = vpack.c.bf16 %v383_v41, %v381_v40  ;;  %v380_v50 = vld [vmem:[%s1788_s28 + $0x140] sm:$0xff]  ;;  %v1077_v54 = vpack.c.bf16 %v511_v45, %v509_v44 }
  0xb7   : > { %1066 = vmatpush1.bf16.msra.mxu1 %v1065_v17  ;;  %v382_v51 = vld [vmem:[%s1788_s28 + $0x150] sm:$0xff]  ;;  %v385_v52 = vld [vmem:[%s1788_s28 + $0x168] sm:$0xff]  ;;  %v387_v53 = vld [vmem:[%s1788_s28 + $0x178] sm:$0xff]  ;;  %v1079_v55 = vpack.c.bf16 %v516_v48, %v514_v47 }
  0xb8   : > { %1068 = vmatprep.subr.bf16.mxu1 %v1067_v18  ;;  %v513_v56 = vld [vmem:[%s1794_s24 + $0x100] sm:$0xff]  ;;  %v515_v57 = vld [vmem:[%s1794_s24 + $0x110] sm:$0xff]  ;;  %v1025_v58 = vpack.c.bf16 %v382_v51, %v380_v50  ;;  %v518_v59 = vld [vmem:[%s1794_s24 + $0x128] sm:$0xff]  ;;  %v1027_v61 = vpack.c.bf16 %v387_v53, %v385_v52 }
  0xb9   : > { %1010 = vmatpush1.bf16.msra.mxu0 %v1009_v9  ;;  %v520_v60 = vld [vmem:[%s1794_s24 + $0x138] sm:$0xff]  ;;  %v384_v62 = vld [vmem:[%s1788_s28 + $0x160] sm:$0xff]  ;;  %v386_v63 = vld [vmem:[%s1788_s28 + $0x170] sm:$0xff]  ;;  %v1081_v2 = vpack.c.bf16 %v515_v57, %v513_v56 }
  0xba   : > { %1012 = vmatprep.subr.bf16.mxu0 %v1011_v12  ;;  %v389_v0 = vld [vmem:[%s1788_s28 + $0x188] sm:$0xff]  ;;  %v391_v1 = vld [vmem:[%s1788_s28 + $0x198] sm:$0xff]  ;;  %v1083_v3 = vpack.c.bf16 %v520_v60, %v518_v59  ;;  %v517_v4 = vld [vmem:[%s1794_s24 + $0x120] sm:$0xff]  ;;  %v1029_v6 = vpack.c.bf16 %v386_v63, %v384_v62 }
  0xbb   : > { %1070 = vmatpush1.bf16.msra.mxu1 %v1069_v29  ;;  %v519_v5 = vld [vmem:[%s1794_s24 + $0x130] sm:$0xff]  ;;  %v522_v7 = vld [vmem:[%s1794_s24 + $0x148] sm:$0xff]  ;;  %v524_v8 = vld [vmem:[%s1794_s24 + $0x158] sm:$0xff]  ;;  %v1031_v9 = vpack.c.bf16 %v391_v1, %v389_v0 }
  0xbc   : > { %1072 = vmatprep.subr.bf16.mxu1 %v1071_v30  ;;  %v388_v10 = vld [vmem:[%s1788_s28 + $0x180] sm:$0xff]  ;;  %v390_v11 = vld [vmem:[%s1788_s28 + $0x190] sm:$0xff]  ;;  %v393_v12 = vld [vmem:[%s1788_s28 + $0x1a8] sm:$0xff]  ;;  %v1085_v14 = vpack.c.bf16 %v519_v5, %v517_v4  ;;  %v1087_v15 = vpack.c.bf16 %v524_v8, %v522_v7 }
  0xbd   : > { %1014 = vmatpush1.bf16.msra.mxu0 %v1013_v21  ;;  %v395_v13 = vld [vmem:[%s1788_s28 + $0x1b8] sm:$0xff]  ;;  %v521_v16 = vld [vmem:[%s1794_s24 + $0x140] sm:$0xff]  ;;  %v523_v17 = vld [vmem:[%s1794_s24 + $0x150] sm:$0xff]  ;;  %v1033_v18 = vpack.c.bf16 %v390_v11, %v388_v10 }
  0xbe   : > { %1016 = vmatprep.subr.bf16.mxu0 %v1015_v24  ;;  %v526_v19 = vld [vmem:[%s1794_s24 + $0x168] sm:$0xff]  ;;  %v528_v20 = vld [vmem:[%s1794_s24 + $0x178] sm:$0xff]  ;;  %v1035_v21 = vpack.c.bf16 %v395_v13, %v393_v12  ;;  %v392_v22 = vld [vmem:[%s1788_s28 + $0x1a0] sm:$0xff]  ;;  %v1089_v26 = vpack.c.bf16 %v523_v17, %v521_v16 }
  0xbf   : > { %1074 = vmatpush1.bf16.msra.mxu1 %v1073_v42  ;;  %v394_v23 = vld [vmem:[%s1788_s28 + $0x1b0] sm:$0xff]  ;;  %v397_v24 = vld [vmem:[%s1788_s28 + $0x1c8] sm:$0xff]  ;;  %v399_v25 = vld [vmem:[%s1788_s28 + $0x1d8] sm:$0xff]  ;;  %v1091_v27 = vpack.c.bf16 %v528_v20, %v526_v19 }
  0xc0   : > { %1076 = vmatprep.subr.bf16.mxu1 %v1075_v43  ;;  %v525_v28 = vld [vmem:[%s1794_s24 + $0x160] sm:$0xff]  ;;  %v527_v29 = vld [vmem:[%s1794_s24 + $0x170] sm:$0xff]  ;;  %v1037_v30 = vpack.c.bf16 %v394_v23, %v392_v22  ;;  %v530_v31 = vld [vmem:[%s1794_s24 + $0x188] sm:$0xff] }
  0xc1   : > { %1018 = vmatpush1.bf16.msra.mxu0 %v1017_v33  ;;  %v532_v32 = vld [vmem:[%s1794_s24 + $0x198] sm:$0xff]  ;;  %v1039_v33 = vpack.c.bf16 %v399_v25, %v397_v24  ;;  %v396_v34 = vld [vmem:[%s1788_s28 + $0x1c0] sm:$0xff]  ;;  %v398_v35 = vld [vmem:[%s1788_s28 + $0x1d0] sm:$0xff]  ;;  %v1093_v38 = vpack.c.bf16 %v527_v29, %v525_v28 }
  0xc2   : > { %1020 = vmatprep.subr.bf16.mxu0 %v1019_v36  ;;  %v401_v36 = vld [vmem:[%s1788_s28 + $0x1e8] sm:$0xff]  ;;  %v403_v37 = vld [vmem:[%s1788_s28 + $0x1f8] sm:$0xff]  ;;  %v1095_v39 = vpack.c.bf16 %v532_v32, %v530_v31  ;;  %v529_v40 = vld [vmem:[%s1794_s24 + $0x180] sm:$0xff]  ;;  %v1041_v42 = vpack.c.bf16 %v398_v35, %v396_v34 }
  0xc3   : > { %1078 = vmatpush1.bf16.msra.mxu1 %v1077_v54  ;;  %v531_v41 = vld [vmem:[%s1794_s24 + $0x190] sm:$0xff]  ;;  %v534_v43 = vld [vmem:[%s1794_s24 + $0x1a8] sm:$0xff]  ;;  %v536_v44 = vld [vmem:[%s1794_s24 + $0x1b8] sm:$0xff]  ;;  %v1043_v45 = vpack.c.bf16 %v403_v37, %v401_v36 }
  0xc4   : > { %1080 = vmatprep.subr.bf16.mxu1 %v1079_v55  ;;  %v402_v47 = vld [vmem:[%s1788_s28 + $0x1f0] sm:$0xff]  ;;  %v1097_v48 = vpack.c.bf16 %v531_v41, %v529_v40  ;;  %v661_v50 = vld [vmem:[%s1796_s26 + $0x18] sm:$0xff]  ;;  %v1099_v51 = vpack.c.bf16 %v536_v44, %v534_v43  ;;  %v533_v52 = vld [vmem:[%s1794_s24 + $0x1a0] sm:$0xff] }
  0xc5   : > { %1022 = vmatpush1.bf16.msra.mxu0 %v1021_v46  ;;  %v400_v46 = vld [vmem:[%s1788_s28 + $0x1e0] sm:$0xff]  ;;  %v535_v53 = vld [vmem:[%s1794_s24 + $0x1b0] sm:$0xff]  ;;  %v538_v55 = vld [vmem:[%s1794_s24 + $0x1c8] sm:$0xff] }
  0xc6   : > { %1024 = vmatprep.subr.bf16.mxu0 %v1023_v49  ;;  %v659_v49 = vld [vmem:[%s1796_s26 + $0x8] sm:$0xff]  ;;  %v1045_v54 = vpack.c.bf16 %v402_v47, %v400_v46  ;;  %v540_v56 = vld [vmem:[%s1794_s24 + $0x1d8] sm:$0xff]  ;;  %v660_v59 = vld [vmem:[%s1796_s26 + $0x10] sm:$0xff]  ;;  %v1101_v60 = vpack.c.bf16 %v535_v53, %v533_v52 }
  0xc7   : > { %1082 = vmatpush1.bf16.msra.mxu1 %v1081_v2  ;;  %v1111_v57 = vpack.c.bf16 %v661_v50, %v659_v49  ;;  %v665_v62 = vld [vmem:[%s1796_s26 + $0x38] sm:$0xff]  ;;  %v1103_v63 = vpack.c.bf16 %v540_v56, %v538_v55  ;;  %v537_v0 = vld [vmem:[%s1794_s24 + $0x1c0] sm:$0xff]  ;;  %v539_v1 = vld [vmem:[%s1794_s24 + $0x1d0] sm:$0xff] }
  0xc8   : > { %1084 = vmatprep.subr.bf16.mxu1 %v1083_v3  ;;  %v336_v2 = vld [vmem:[#allocation3] sm:$0xff]  ;;  %v542_v3 = vld [vmem:[%s1794_s24 + $0x1e8] sm:$0xff]  ;;  %v544_v4 = vld [vmem:[%s1794_s24 + $0x1f8] sm:$0xff]  ;;  %v1105_v10 = vpack.c.bf16 %v539_v1, %v537_v0 }
  0xc9   : > { %1026 = vmatpush1.bf16.msra.mxu0 %v1025_v58  ;;  %v658_v58 = vld [vmem:[%s1796_s26] sm:$0xff]  ;;  %v667_v11 = vld [vmem:[%s1796_s26 + $0x48] sm:$0xff]  ;;  %v669_v12 = vld [vmem:[%s1796_s26 + $0x58] sm:$0xff]  ;;  %v1107_v13 = vpack.c.bf16 %v544_v4, %v542_v3 }
  0xca   : > { %1028 = vmatprep.subr.bf16.mxu0 %v1027_v61  ;;  %v663_v61 = vld [vmem:[%s1796_s26 + $0x28] sm:$0xff]  ;;  %v1113_v5 = vpack.c.bf16 %v660_v59, %v658_v58  ;;  %v662_v8 = vld [vmem:[%s1796_s26 + $0x20] sm:$0xff]  ;;  %v338_v16 = vld [vmem:[#allocation3 + $0x10] sm:$0xff] }
  0xcb   : > { %1086 = vmatpush1.bf16.msra.mxu1 %v1085_v14  ;;  %v1115_v7 = vpack.c.bf16 %v665_v62, %v663_v61  ;;  %v541_v14 = vld [vmem:[%s1794_s24 + $0x1e0] sm:$0xff]  ;;  %v668_v20 = vld [vmem:[%s1796_s26 + $0x50] sm:$0xff]  ;;  %v671_v22 = vld [vmem:[%s1796_s26 + $0x68] sm:$0xff] }
  0xcc   : > { %1088 = vmatprep.subr.bf16.mxu1 %v1087_v15  ;;  %v543_v15 = vld [vmem:[%s1794_s24 + $0x1f0] sm:$0xff]  ;;  %v666_v19 = vld [vmem:[%s1796_s26 + $0x40] sm:$0xff]  ;;  %v673_v23 = vld [vmem:[%s1796_s26 + $0x78] sm:$0xff] }
  0xcd   : > { %1030 = vmatpush1.bf16.msra.mxu0 %v1029_v6  ;;  %v339_v6 = vld [vmem:[#allocation3 + $0x18] sm:$0xff]  ;;  %v1121_v24 = vpack.c.bf16 %v668_v20, %v666_v19  ;;  %v1123_v25 = vpack.c.bf16 %v673_v23, %v671_v22  ;;  %v675_v28 = vld [vmem:[%s1796_s26 + $0x88] sm:$0xff]  ;;  %v674_v32 = vld [vmem:[%s1796_s26 + $0x80] sm:$0xff] }
  0xce   : > { %1032 = vmatprep.subr.bf16.mxu0 %v1031_v9  ;;  %v664_v9 = vld [vmem:[%s1796_s26 + $0x30] sm:$0xff]  ;;  %v677_v29 = vld [vmem:[%s1796_s26 + $0x98] sm:$0xff]  ;;  %v679_v34 = vld [vmem:[%s1796_s26 + $0xa8] sm:$0xff] }
  0xcf   : > { %1090 = vmatpush1.bf16.msra.mxu1 %v1089_v26  ;;  %v1117_v17 = vpack.c.bf16 %v664_v9, %v662_v8  ;;  %v670_v26 = vld [vmem:[%s1796_s26 + $0x60] sm:$0xff]  ;;  %v1127_v31 = vpack.c.bf16 %v677_v29, %v675_v28  ;;  %v681_v35 = vld [vmem:[%s1796_s26 + $0xb8] sm:$0xff]  ;;  %v683_v40 = vld [vmem:[%s1796_s26 + $0xc8] sm:$0xff] }
  0xd0   : > { %1092 = vmatprep.subr.bf16.mxu1 %v1091_v27  ;;  %v672_v27 = vld [vmem:[%s1796_s26 + $0x70] sm:$0xff]  ;;  %v1131_v37 = vpack.c.bf16 %v681_v35, %v679_v34  ;;  %v685_v41 = vld [vmem:[%s1796_s26 + $0xd8] sm:$0xff]  ;;  %v682_v44 = vld [vmem:[%s1796_s26 + $0xc0] sm:$0xff] }
  0xd1   : > { %1034 = vmatpush1.bf16.msra.mxu0 %v1033_v18  ;;  %v1119_v18 = vpack.c.bf16 %v669_v12, %v667_v11  ;;  %v1135_v43 = vpack.c.bf16 %v685_v41, %v683_v40  ;;  %v687_v46 = vld [vmem:[%s1796_s26 + $0xe8] sm:$0xff]  ;;  %v689_v47 = vld [vmem:[%s1796_s26 + $0xf8] sm:$0xff]  ;;  %v686_v50 = vld [vmem:[%s1796_s26 + $0xe0] sm:$0xff] }
  0xd2   : > { %1036 = vmatprep.subr.bf16.mxu0 %v1035_v21  ;;  %v1109_v21 = vpack.c.bf16 %v543_v15, %v541_v14  ;;  %v1139_v49 = vpack.c.bf16 %v689_v47, %v687_v46  ;;  %v691_v53 = vld [vmem:[%s1796_s26 + $0x108] sm:$0xff]  ;;  %v690_v56 = vld [vmem:[%s1796_s26 + $0x100] sm:$0xff]  ;;  %v705_v8 = vld [vmem:[%s1796_s26 + $0x178] sm:$0xff] }
  0xd3   : > { %1094 = vmatpush1.bf16.msra.mxu1 %v1093_v38  ;;  %v678_v38 = vld [vmem:[%s1796_s26 + $0xa0] sm:$0xff]  ;;  %v695_v59 = vld [vmem:[%s1796_s26 + $0x128] sm:$0xff]  ;;  %v704_v11 = vld [vmem:[%s1796_s26 + $0x170] sm:$0xff] }
  0xd4   : > { %1096 = vmatprep.subr.bf16.mxu1 %v1095_v39  ;;  %v680_v39 = vld [vmem:[%s1796_s26 + $0xb0] sm:$0xff]  ;;  %v694_v62 = vld [vmem:[%s1796_s26 + $0x120] sm:$0xff]  ;;  %v699_v1 = vld [vmem:[%s1796_s26 + $0x148] sm:$0xff] }
  0xd5   : > { %1038 = vmatpush1.bf16.msra.mxu0 %v1037_v30  ;;  %v1125_v30 = vpack.c.bf16 %v672_v27, %v670_v26  ;;  %v698_v4 = vld [vmem:[%s1796_s26 + $0x140] sm:$0xff]  ;;  %v709_v14 = vld [vmem:[%s1796_s26 + $0x198] sm:$0xff]  ;;  %v711_v19 = vld [vmem:[%s1796_s26 + $0x1a8] sm:$0xff] }
  0xd6   : > { %1040 = vmatprep.subr.bf16.mxu0 %v1039_v33  ;;  %v676_v33 = vld [vmem:[%s1796_s26 + $0x90] sm:$0xff]  ;;  %v713_v20 = vld [vmem:[%s1796_s26 + $0x1b8] sm:$0xff]  ;;  %v710_v22 = vld [vmem:[%s1796_s26 + $0x1a0] sm:$0xff] }
  0xd7   : > { %1098 = vmatpush1.bf16.msra.mxu1 %v1097_v48  ;;  %v1129_v36 = vpack.c.bf16 %v676_v33, %v674_v32  ;;  %v712_v23 = vld [vmem:[%s1796_s26 + $0x1b0] sm:$0xff]  ;;  %v717_v26 = vld [vmem:[%s1796_s26 + $0x1d8] sm:$0xff]  ;;  %v714_v28 = vld [vmem:[%s1796_s26 + $0x1c0] sm:$0xff] }
  0xd8   : > { %1100 = vmatprep.subr.bf16.mxu1 %v1099_v51  ;;  %v688_v51 = vld [vmem:[%s1796_s26 + $0xf0] sm:$0xff]  ;;  %v721_v32 = vld [vmem:[%s1796_s26 + $0x1f8] sm:$0xff]  ;;  %v718_v34 = vld [vmem:[%s1796_s26 + $0x1e0] sm:$0xff] }
  0xd9   : > { %1042 = vmatpush1.bf16.msra.mxu0 %v1041_v42  ;;  %v1133_v42 = vpack.c.bf16 %v680_v39, %v678_v38  ;;  %v1141_v52 = vpack.c.bf16 %v688_v51, %v686_v50  ;;  %v716_v29 = vld [vmem:[%s1796_s26 + $0x1d0] sm:$0xff] }
  0xda   : > { %1044 = vmatprep.subr.bf16.mxu0 %v1043_v45  ;;  %v684_v45 = vld [vmem:[%s1796_s26 + $0xd0] sm:$0xff] }
  0xdb   : > { %1102 = vmatpush1.bf16.msra.mxu1 %v1101_v60  ;;  %v1137_v48 = vpack.c.bf16 %v684_v45, %v682_v44  ;;  %v697_v60 = vld [vmem:[%s1796_s26 + $0x138] sm:$0xff]  ;;  %v720_v35 = vld [vmem:[%s1796_s26 + $0x1f0] sm:$0xff] }
  0xdc   : > { %1104 = vmatprep.subr.bf16.mxu1 %v1103_v63  ;;  %v1147_v61 = vpack.c.bf16 %v697_v60, %v695_v59  ;;  %v696_v63 = vld [vmem:[%s1796_s26 + $0x130] sm:$0xff] }
  0xdd   : > { %1046 = vmatpush1.bf16.msra.mxu0 %v1045_v54  ;;  %v693_v54 = vld [vmem:[%s1796_s26 + $0x118] sm:$0xff]  ;;  %v1149_v0 = vpack.c.bf16 %v696_v63, %v694_v62 }
  0xde   : > { %1112 = vmatprep.subr.bf16.mxu0 %v1111_v57  ;;  %v1143_v55 = vpack.c.bf16 %v693_v54, %v691_v53 }
  0xdf   : > { %1106 = vmatpush1.bf16.msra.mxu1 %v1105_v10  ;;  %v702_v10 = vld [vmem:[%s1796_s26 + $0x160] sm:$0xff] }
  0xe0   : > { %469 = vmatmul.mubr.f32.vlgmr.msra.gmra.mrb[0].mxu0 %v336_v2  ;;  %1108 = vmatprep.subr.bf16.mxu1 %v1107_v13  ;;  %v1157_v12 = vpack.c.bf16 %v704_v11, %v702_v10  ;;  %v707_v13 = vld [vmem:[%s1796_s26 + $0x188] sm:$0xff]  ;;  %v656_v11 = vld [vmem:[#allocation2 + $0x10] sm:$0xff] }
  0xe1   : > { %474 = vmatprep.mubr.f32.mxu0 %v339_v6  ;;  %1114 = vmatpush1.bf16.msra.mxu0 %v1113_v5  ;;  %v1159_v15 = vpack.c.bf16 %v709_v14, %v707_v13 }
  0xe2   : > { %1116 = vmatprep.subr.bf16.mxu0 %v1115_v7 }
  0xe3   : > { %1110 = vmatpush1.bf16.msra.mxu1 %v1109_v21  ;;  %v1163_v21 = vpack.c.bf16 %v713_v20, %v711_v19 }
  0xe4   : > { %475 = vmatmul.mubr.f32.gmra.mrb[2].mxu0 %v338_v16  ;;  %1175 = vmatprep.subr.bf16.mxu1 %v1111_v57  ;;  %v692_v57 = vld [vmem:[%s1796_s26 + $0x110] sm:$0xff] }
  0xe5   : > { %1118 = vmatpush1.bf16.msra.mxu0 %v1117_v17  ;;  %v1145_v58 = vpack.c.bf16 %v692_v57, %v690_v56 }
  0xe6   : > { %1120 = vmatprep.subr.bf16.mxu0 %v1119_v18  ;;  %610 = vmatmul.mubr.f32.vlgmr.msra.gmra.mrb[0].mxu1 %v336_v2  ;;  %v701_v2 = vld [vmem:[%s1796_s26 + $0x158] sm:$0xff] }
  0xe7   : > { %615 = vmatprep.mubr.f32.mxu1 %v339_v6  ;;  %1191 = vmatpush1.bf16.msra.mxu1 %v1113_v5  ;;  %v1151_v3 = vpack.c.bf16 %v701_v2, %v699_v1  ;;  %v700_v5 = vld [vmem:[%s1796_s26 + $0x150] sm:$0xff] }
  0xe8   : > { %1176 = vmatprep.subr.bf16.mxu1 %v1115_v7  ;;  %v1153_v6 = vpack.c.bf16 %v700_v5, %v698_v4  ;;  %v703_v7 = vld [vmem:[%s1796_s26 + $0x168] sm:$0xff]  ;;  %v654_v5 = vld [vmem:[#allocation2] sm:$0xff] }
  0xe9   : > { %1122 = vmatpush1.bf16.msra.mxu0 %v1121_v24  ;;  %v1155_v9 = vpack.c.bf16 %v705_v8, %v703_v7 }
  0xea   : > { %1124 = vmatprep.subr.bf16.mxu0 %v1123_v25  ;;  %616 = vmatmul.mubr.f32.gmra.mrb[2].mxu1 %v338_v16  ;;  %v706_v16 = vld [vmem:[%s1796_s26 + $0x180] sm:$0xff] }
  0xeb   : > { %1192 = vmatpush1.bf16.msra.mxu1 %v1117_v17  ;;  %v708_v17 = vld [vmem:[%s1796_s26 + $0x190] sm:$0xff] }
  0xec   : > { %1177 = vmatprep.subr.bf16.mxu1 %v1119_v18  ;;  %v1161_v18 = vpack.c.bf16 %v708_v17, %v706_v16 }
  0xed   : > { %1126 = vmatpush1.bf16.msra.mxu0 %v1125_v30 }
  0xee   : > { %1128 = vmatprep.subr.bf16.mxu0 %v1127_v31 }
  0xef   : > { %1193 = vmatpush1.bf16.msra.mxu1 %v1121_v24  ;;  %v1165_v24 = vpack.c.bf16 %v712_v23, %v710_v22 }
  0xf0   : > { %1178 = vmatprep.subr.bf16.mxu1 %v1123_v25  ;;  %v715_v25 = vld [vmem:[%s1796_s26 + $0x1c8] sm:$0xff] }
  0xf1   : > { %1130 = vmatpush1.bf16.msra.mxu0 %v1129_v36  ;;  %v1167_v27 = vpack.c.bf16 %v717_v26, %v715_v25 }
  0xf2   : > { %1132 = vmatprep.subr.bf16.mxu0 %v1131_v37 }
  0xf3   : > { %1194 = vmatpush1.bf16.msra.mxu1 %v1125_v30  ;;  %v1169_v30 = vpack.c.bf16 %v716_v29, %v714_v28 }
  0xf4   : > { %1179 = vmatprep.subr.bf16.mxu1 %v1127_v31  ;;  %v719_v31 = vld [vmem:[%s1796_s26 + $0x1e8] sm:$0xff] }
  0xf5   : > { %1134 = vmatpush1.bf16.msra.mxu0 %v1133_v42  ;;  %v1171_v33 = vpack.c.bf16 %v721_v32, %v719_v31 }
  0xf6   : > { %1136 = vmatprep.subr.bf16.mxu0 %v1135_v43 }
  0xf7   : > { %1195 = vmatpush1.bf16.msra.mxu1 %v1129_v36  ;;  %v1173_v36 = vpack.c.bf16 %v720_v35, %v718_v34 }
  0xf8   : > { %1180 = vmatprep.subr.bf16.mxu1 %v1131_v37 }
  0xf9   : > { %1138 = vmatpush1.bf16.msra.mxu0 %v1137_v48 }
  0xfa   : > { %1140 = vmatprep.subr.bf16.mxu0 %v1139_v49 }
  0xfb   : > { %1196 = vmatpush1.bf16.msra.mxu1 %v1133_v42 }
  0xfc   : > { %1181 = vmatprep.subr.bf16.mxu1 %v1135_v43 }
  0xfd   : > { %1142 = vmatpush1.bf16.msra.mxu0 %v1141_v52 }
  0xfe   : > { %1144 = vmatprep.subr.bf16.mxu0 %v1143_v55 }
  0xff   : > { %1197 = vmatpush1.bf16.msra.mxu1 %v1137_v48 }
 0x100   : > { %1182 = vmatprep.subr.bf16.mxu1 %v1139_v49 }
 0x101   : > { %1146 = vmatpush1.bf16.msra.mxu0 %v1145_v58 }
 0x102   : > { %1148 = vmatprep.subr.bf16.mxu0 %v1147_v61 }
 0x103   : > { %1198 = vmatpush1.bf16.msra.mxu1 %v1141_v52 }
 0x104   : > { %1183 = vmatprep.subr.bf16.mxu1 %v1143_v55 }
 0x105   : > { %1150 = vmatpush1.bf16.msra.mxu0 %v1149_v0 }
 0x106   : > { %1152 = vmatprep.subr.bf16.mxu0 %v1151_v3 }
 0x107   : > { %1199 = vmatpush1.bf16.msra.mxu1 %v1145_v58 }
 0x108   : > { %1184 = vmatprep.subr.bf16.mxu1 %v1147_v61 }
 0x109   : > { %1154 = vmatpush1.bf16.msra.mxu0 %v1153_v6 }
 0x10a   : > { %1156 = vmatprep.subr.bf16.mxu0 %v1155_v9 }
 0x10b   : > { %1200 = vmatpush1.bf16.msra.mxu1 %v1149_v0 }
 0x10c   : > { %1185 = vmatprep.subr.bf16.mxu1 %v1151_v3 }
 0x10d   : > { %1158 = vmatpush1.bf16.msra.mxu0 %v1157_v12 }
 0x10e   : > { %1160 = vmatprep.subr.bf16.mxu0 %v1159_v15 }
 0x10f   : > { %1201 = vmatpush1.bf16.msra.mxu1 %v1153_v6  ;;  %v655_v6 = vld [vmem:[#allocation2 + $0x8] sm:$0xff] }
 0x110   : > { %1186 = vmatprep.subr.bf16.mxu1 %v1155_v9 }
 0x111   : > { %1162 = vmatpush1.bf16.msra.mxu0 %v1161_v18 }
 0x112   : > { %1164 = vmatprep.subr.bf16.mxu0 %v1163_v21 }
 0x113   : > { %1202 = vmatpush1.bf16.msra.mxu1 %v1157_v12  ;;  %v657_v12 = vld [vmem:[#allocation2 + $0x18] sm:$0xff] }
 0x114   : > { %1187 = vmatprep.subr.bf16.mxu1 %v1159_v15 }
 0x115   : > { %1166 = vmatpush1.bf16.msra.mxu0 %v1165_v24 }
 0x116   : > { %1168 = vmatprep.subr.bf16.mxu0 %v1167_v27 }
 0x117   : > { %1203 = vmatpush1.bf16.msra.mxu1 %v1161_v18 }
 0x118   : > { %1188 = vmatprep.subr.bf16.mxu1 %v1163_v21 }
 0x119   : > { %1170 = vmatpush1.bf16.msra.mxu0 %v1169_v30 }
 0x11a   : > { %1172 = vmatprep.subr.bf16.mxu0 %v1171_v33 }
 0x11b   : > { %1204 = vmatpush1.bf16.msra.mxu1 %v1165_v24 }
 0x11c   : > { %1189 = vmatprep.subr.bf16.mxu1 %v1167_v27 }
 0x11d   : > { %1174 = vmatpush1.bf16.msra.mxu0 %v1173_v36 }
 0x11f   : > { %1205 = vmatpush1.bf16.msra.mxu1 %v1169_v30 }
 0x120   : > { %1190 = vmatprep.subr.bf16.mxu1 %v1171_v33 }
 0x123   : > { %1206 = vmatpush1.bf16.msra.mxu1 %v1173_v36 }
 0x1b3   : > { %v470_v37 = vpop.f32.mrb[0].mxu0 }
 0x1b4   : > { %v970_v38 = vmul.f32 -1.442695, %v470_v37  ;;  %v472_v39 = vpop.f32.mrb[1].mxu0 }
 0x1b5   : > { %v971_v40 = vmul.f32 -1.442695, %v472_v39 }
 0x1b6   : > { %1296 = vpow2.f32 %v970_v38 }
 0x1b7   : > { %1298 = vpow2.f32 %v971_v40  ;;  %v476_v41 = vpop.f32.mrb[2].mxu0 }
 0x1b8   : > { %v972_v42 = vmul.f32 -1.442695, %v476_v41  ;;  %v478_v43 = vpop.f32.mrb[3].mxu0 }
 0x1b9   : > { %v973_v44 = vmul.f32 -1.442695, %v478_v43  ;;  %v611_v45 = vpop.f32.mrb[0].mxu1 }
 0x1ba   : > { %1300 = vpow2.f32 %v972_v42  ;;  %v613_v46 = vpop.f32.mrb[1].mxu1 }
 0x1bb   : > { %1302 = vpow2.f32 %v973_v44 }
 0x1bd   : > { %v617_v50 = vpop.f32.mrb[2].mxu1 }
 0x1be   : > { %v619_v52 = vpop.f32.mrb[3].mxu1 }
 0x1c0   : > { %v1297_v47 = vpop.eup %1296 }
 0x1c1   : > { %v1299_v48 = vpop.eup %1298  ;;  %v634_v49 = vadd.f32 1.0, %v1297_v47 }
 0x1c2   : > { %v635_v51 = vadd.f32 1.0, %v1299_v48 }
 0x1c3   : > { %1304 = vrcp.f32 %v634_v49 }
 0x1c4   : > { %v1301_v53 = vpop.eup %1300  ;;  %1306 = vrcp.f32 %v635_v51 }
 0x1c5   : > { %v1303_v54 = vpop.eup %1302  ;;  %v636_v55 = vadd.f32 1.0, %v1301_v53 }
 0x1c6   : > { %v637_v56 = vadd.f32 1.0, %v1303_v54 }
 0x1c7   : > { %1308 = vrcp.f32 %v636_v55 }
 0x1c8   : > { %1310 = vrcp.f32 %v637_v56 }
 0x1cd   : > { %v1305_v57 = vpop.eup %1304 }
 0x1ce   : > { %v1307_v58 = vpop.eup %1306  ;;  %v646_v59 = vmul.f32 %v1305_v57, %v470_v37 }
 0x1cf   : > { %v647_v60 = vmul.f32 %v1307_v58, %v472_v39 }
 0x1d0   : > { %v650_v61 = vmul.f32 %v646_v59, %v611_v45 }
 0x1d1   : > { %v1309_v62 = vpop.eup %1308  ;;  %v651_v63 = vmul.f32 %v647_v60, %v613_v46 }
 0x1d2   : > { %v1311_v0 = vpop.eup %1310  ;;  %v648_v1 = vmul.f32 %v1309_v62, %v476_v41 }
 0x1d3   : > { %v649_v2 = vmul.f32 %v1311_v0, %v478_v43  ;;  %786 = vmatprep.mubr.f32.mxu0 %v651_v63 }
 0x1d4   : > { %v652_v3 = vmul.f32 %v648_v1, %v617_v50  ;;  %787 = vmatmul.mubr.f32.vlgmr.msra.gmra.mrb[4].mxu0 %v650_v61 }
 0x1d5   : > { %v653_v4 = vmul.f32 %v649_v2, %v619_v52 }
 0x1d7   : > { %792 = vmatprep.mubr.f32.mxu1 %v653_v4 }
 0x1d8   : > { %793 = vmatmul.mubr.f32.vlgmr.msra.gmra.mrb[4].mxu1 %v652_v3 }
 0x2a7   : > { %v788_v7 = vpop.f32.mrb[4].mxu0 }
 0x2a8   : > { %v799_v8 = vadd.f32 %v788_v7, %v654_v5  ;;  %v790_v9 = vpop.f32.mrb[5].mxu0 }
 0x2a9   : > { %v800_v10 = vadd.f32 %v790_v9, %v655_v6  ;;  %810 = sbr.rel (%p974_p4) target bundleno = 696 (0x2b8), region = 60 }
 0x2aa   : > { %803 = vst [vmem:[#allocation2] sm:$0xff] %v799_v8 }
 0x2ab   : > { %804 = vst [vmem:[#allocation2 + $0x8] sm:$0xff] %v800_v10  ;;  %v794_v13 = vpop.f32.mrb[4].mxu1 }
 0x2ac   : > { %v801_v14 = vadd.f32 %v794_v13, %v656_v11  ;;  %v796_v15 = vpop.f32.mrb[5].mxu1 }
 0x2ad   : > { %v802_v16 = vadd.f32 %v796_v15, %v657_v12 }
 0x2ae   : > { %805 = vst [vmem:[#allocation2 + $0x10] sm:$0xff] %v801_v14 }
 0x2af   : > { %806 = vst [vmem:[#allocation2 + $0x18] sm:$0xff] %v802_v16 }
 0x2b1   : > { %v811_v17 = vld [vmem:[#allocation2] sm:$0xff] }
 0x2b2   : > { %v812_v18 = vld [vmem:[#allocation2 + $0x8] sm:$0xff]  ;;  %815 = vst [vmem:[#allocation11] sm:$0xff] %v811_v17 }
 0x2b3   : > { %816 = vst [vmem:[#allocation11 + $0x8] sm:$0xff] %v812_v18 }
 0x2b5   : > { %v813_v19 = vld [vmem:[#allocation2 + $0x10] sm:$0xff] }
 0x2b6   : > { %817 = vst [vmem:[#allocation11 + $0x10] sm:$0xff] %v813_v19  ;;  %v814_v20 = vld [vmem:[#allocation2 + $0x18] sm:$0xff] }
 0x2b7   : > { %818 = vst [vmem:[#allocation11 + $0x18] sm:$0xff] %v814_v20 }
 0x2b8 PF: > { %p1238_p7 = scmp.eq.s32.totalorder %s1663_s30, 1  ;;  %s1528_s5 = smov [#allocation11]  }
 0x2b9   : > { %s829_s23 = sshll.u32 %s1528_s5, 4  ;;  %s830_s23 = int_to_ptr.vmem [resolvable:$true] %s829_s23 }
 0x2ba   : > { %s1430_s8 = scalar_lea.vmem %s830_s23, 512  ;;  %p1437_p6 = scmp.lt.s32.totalorder %s830_s23, %s830_s23 }
 0x2bb   : > { %p1431_p9 = scmp.ne.s32.totalorder %s830_s23, %s1430_s8  ;;  %p1438_p13 = scmp.lt.s32.totalorder %s1430_s8, %s1430_s8 }
 0x2bd   : > { %p1432_p12 = pnand %p1431_p9, %p1238_p7  ;;  %p1439_p3 = por %p1438_p13, %p1437_p6 }
 0x2bf   : > { %p1433_p10 = pneg %p1432_p12 }
 0x2c1   : > { %p1440_p2 = pnand %p1439_p3, %p1433_p10 }
 0x2c3   : > { %1443 = shalt.err (!%p1440_p2)
}
 0x2c4   : > { %s1444_s29 = scalar_lea.hbm %s2041_s4, 512 }
 0x2c5   : > { %p1445_p8 = scmp.ne.s32.totalorder %s2041_s4, %s1444_s29  ;;  %p1450_p0 = scmp.lt.u32.totalorder %s1444_s29, %s2041_s4 }
 0x2c7   : > { %p1446_p5 = pnand %p1445_p8, %p1238_p7 }
 0x2c9   : > { %p1447_p11 = pneg %p1446_p5 }
 0x2cb   : > { %p1452_p1 = pnand %p1450_p0, %p1447_p11 }
 0x2cd   : > { %1455 = shalt.err (!%p1452_p1)
}
 0x2ce   : > { %s1529_s25 = smov 256   ;;  %s1530_s10 = smov 16  }
 0x2cf   : > { %1218 = dma.vmem_to_hbm [thread:$0]  (%p1238_p7), %s830_s23, 512, %s2041_s4, [#allocation5], %s1529_s25, %s1529_s25, %s1530_s10  }
 0x2d0   : > { %1493 = dma.done.wait (%p1238_p7), [#allocation5], 512  }
 0x2d1   : > { %1495 = vsyncadd (%p1238_p7), [#allocation5], 4294966784 }
 0x2d2 PF: > { %s22_s20 = sadd.s32 1, %s1518_s20   ;;  %s2073_s15 = smov %s1502_s16 }
 0x2d3   : > { %p19_p4 = scmp.ge.s32.totalorder %s22_s20, 4   ;;  %s2074_s16 = smov %s1506_s17 }
 0x2d4   : > { %s2075_s17 = smov %s1603_s27  ;;  %s2076_s18 = smov %s1514_s19 }
 0x2d5   : > { %s2077_s19 = smov %s2079_s21  ;;  %21 = sbr.rel (!%p19_p4) target bundleno = 11 (0xb), region = 112 }
 0x2dc   :  { %845 = vsyncpa [#allocation4], 1 }
 0x2dd   :  { %847 = vsyncpa [#allocation4 + $0x1], 1 }
 0x2de   :  { %848 = vsyncpa [#allocation7], 1 }
 0x2df   :  { %850 = vsyncpa [#allocation7 + $0x1], 1 }
 0x2e0   :  { %851 = vsyncpa [#allocation10], 1 }
 0x2e1   :  { %853 = vsyncpa [#allocation10 + $0x1], 1 }
 0x2e2   :  { %854 = vsyncpa [#allocation5], 1 }
 0x2e3   :  { %856 = vsyncpa [#allocation5 + $0x1], 1 }

</bundles_post_ra>
